<compile_context>
chip_gen: v5e
topology: v5e:2x2
jax: 0.10.0
libtpu: 0.0.40
codegen_flags: <defaults>
</compile_context>

<pallas_src>
import functools
import math

import jax
import jax.numpy as jnp
from jax.experimental import pallas as pl
from jax.experimental.pallas import tpu as pltpu


# ----------------------------------------------------------------------------
# helpers
# ----------------------------------------------------------------------------
def _round_up(x, m):
    return (x + m - 1) // m * m


def _choose_tk(repr_dim):
    # Large K tile (cuts per-grid-step overhead); obs tile TB*TK stays ~1 MiB.
    return min(2048, _round_up(repr_dim, 128))


def _nbytes(shape, dtype):
    return math.prod(shape) * jnp.dtype(dtype).itemsize


# ----------------------------------------------------------------------------
# kernel
# ----------------------------------------------------------------------------
def actor_kernel(obs_ref,            # [TB, TK]            bf16 (streamed)
                 w1_ref,             # [K_pad, F_pad]      bf16 (VMEM-resident)
                 w2_ref,             # [F_pad, H_pad]      bf16 (resident)
                 w3_ref,             # [H_pad, H_pad]      bf16 (resident)
                 w4_ref,             # [H_pad, A_pad]      bf16 (resident)
                 vec_ref,            # [6, Dmax] packed b1,g,beta,b2,b3,b4 (f32)
                 mu_ref,             # [TB, A_pad]         f32 output
                 acc_ref,            # [TB, F_pad]         f32 scratch
                 *, true_f, tk):
    k = pl.program_id(1)
    nk = pl.num_programs(1)

    @pl.when(k == 0)
    def _():
        acc_ref[...] = jnp.zeros_like(acc_ref)

    # Partial first matmul for this K tile.  obs is already bf16; w1 is the
    # whole (padded) matrix resident in VMEM -> slice the K rows for this step
    # (fetched from HBM only once for the entire grid, not per batch tile).
    row0 = pl.multiple_of(k * tk, tk)
    acc_ref[...] += jnp.dot(obs_ref[...], w1_ref[pl.ds(row0, tk), :],
                            preferred_element_type=jnp.float32)

    @pl.when(k == nk - 1)
    def _():
        f_pad = w2_ref.shape[0]
        h_pad = w3_ref.shape[0]
        a_pad = w4_ref.shape[1]

        vec = vec_ref[...]                         # (6, Dmax) f32, static slices
        b1, g, beta = vec[0:1, :f_pad], vec[1:2, :f_pad], vec[2:3, :f_pad]
        b2, b3 = vec[3:4, :h_pad], vec[4:5, :h_pad]
        b4 = vec[5:6, :a_pad]

        # trunk: Linear (done) -> LayerNorm over the TRUE feature_dim -> Tanh.
        # Padded feature columns are exactly zero (w1/b1 pads are zero), so
        # sums over the padded width divided by true_f give exact statistics.
        h = acc_ref[...] + b1
        inv_f = 1.0 / float(true_f)
        mean = jnp.sum(h, axis=-1, keepdims=True) * inv_f
        ex2 = jnp.sum(h * h, axis=-1, keepdims=True) * inv_f
        var = jnp.maximum(ex2 - mean * mean, 0.0)
        h = (h - mean) * jax.lax.rsqrt(var + 1e-5)
        h = h * g + beta                 # padded cols: g = beta = 0 -> stay 0
        h = jnp.tanh(h)

        # policy: Linear -> ReLU -> Linear -> ReLU -> Linear -> tanh
        # (padded rows/cols of w2/w3/w4 and biases are zero -> exact).
        h = jnp.dot(h.astype(jnp.bfloat16), w2_ref[...],
                    preferred_element_type=jnp.float32) + b2
        h = jnp.maximum(h, 0.0)
        h = jnp.dot(h.astype(jnp.bfloat16), w3_ref[...],
                    preferred_element_type=jnp.float32) + b3
        h = jnp.maximum(h, 0.0)
        mu = jnp.dot(h.astype(jnp.bfloat16), w4_ref[...],
                     preferred_element_type=jnp.float32) + b4
        mu_ref[...] = jnp.tanh(mu)
        # TODO(synk): utils.TruncatedNormal is a distribution object
        # (sampling / log_prob); the forward pass only produces (mu, std).


# ----------------------------------------------------------------------------
# wrapper
# ----------------------------------------------------------------------------
@functools.partial(jax.jit, static_argnames=("feature_dim", "action_dim"))
def actor_forward(obs, std, w1, w2, w3, w4, vec, *, feature_dim, action_dim):
    """obs: (B, repr_dim) — ideally already bf16 upstream (encoder output).
    w1..w4 / vec: lane-padded params from prepare_actor_params()."""
    B, repr_dim = obs.shape
    K_pad, F_pad = w1.shape
    H_pad = w3.shape[0]
    A_pad = w4.shape[1]

    TK = _choose_tk(repr_dim)
    assert K_pad == _round_up(repr_dim, TK), "params not prepared for this repr_dim"

    # --- batch tiling: multiple of 16 (bf16 sublane packing); keep >=2 batch
    #     tiles when the batch is big enough so v7x's two TCs both get work.
    B16 = _round_up(B, 16)
    if B16 >= 512:
        TB = 256
    elif B16 >= 64:
        TB = _round_up(B16 // 2, 16)
    else:
        TB = B16
    B_pad = _round_up(B16, TB)

    # obs -> bf16, zero-pad batch rows and repr columns (exact for the matmul).
    obs_p = jnp.pad(obs.astype(jnp.bfloat16),
                    ((0, B_pad - B), (0, K_pad - repr_dim)))

    grid = (B_pad // TB, K_pad // TK)

    grid_spec = pltpu.PrefetchScalarGridSpec(
        num_scalar_prefetch=0,
        grid=grid,
        in_specs=[
            pl.BlockSpec((TB, TK), lambda i, k: (i, k)),        # obs (streamed)
            pl.BlockSpec((K_pad, F_pad), lambda i, k: (0, 0)),  # w1 (resident)
            pl.BlockSpec((F_pad, H_pad), lambda i, k: (0, 0)),  # w2 (resident)
            pl.BlockSpec((H_pad, H_pad), lambda i, k: (0, 0)),  # w3 (resident)
            pl.BlockSpec((H_pad, A_pad), lambda i, k: (0, 0)),  # w4 (resident)
            pl.BlockSpec(vec.shape, lambda i, k: (0, 0)),       # packed vectors
        ],
        out_specs=pl.BlockSpec((TB, A_pad), lambda i, k: (i, 0)),
        scratch_shapes=[pltpu.VMEM((TB, F_pad), jnp.float32)],
    )

    # VMEM budget from actual buffer sizes (assume 2 buffers each) + margin.
    vmem_need = (
        2 * _nbytes((TB, TK), jnp.bfloat16)
        + 2 * _nbytes(w1.shape, jnp.bfloat16)
        + 2 * _nbytes(w2.shape, jnp.bfloat16)
        + 2 * _nbytes(w3.shape, jnp.bfloat16)
        + 2 * _nbytes(w4.shape, jnp.bfloat16)
        + 2 * _nbytes(vec.shape, jnp.float32)
        + 2 * _nbytes((TB, A_pad), jnp.float32)
        + _nbytes((TB, F_pad), jnp.float32)
    )
    vmem_limit = max(int(vmem_need * 1.25) + (2 << 20), 16 << 20)

    kernel = functools.partial(actor_kernel, true_f=feature_dim, tk=TK)

    mu_full = pl.pallas_call(
        kernel,
        out_shape=jax.ShapeDtypeStruct((B_pad, A_pad), jnp.float32),
        grid_spec=grid_spec,
        compiler_params=pltpu.CompilerParams(
            dimension_semantics=("parallel", "arbitrary"),
            vmem_limit_bytes=vmem_limit,
        ),
    )(obs_p, w1, w2, w3, w4, vec)

    mu = mu_full[:B, :action_dim]
    # std = torch.ones_like(mu) * std  -> pure constant broadcast, no kernel.
    std_out = jnp.full((B, action_dim), std, jnp.float32)
    return mu, std_out


# ----------------------------------------------------------------------------
# parameter preparation (one-time): lane-dense padding + bias packing
# ----------------------------------------------------------------------------
def prepare_actor_params(p):
    repr_dim, feature_dim = p["w1"].shape
    hidden_dim = p["w2"].shape[1]
    action_dim = p["w4"].shape[1]

    F_pad = _round_up(feature_dim, 128)
    H_pad = _round_up(hidden_dim, 128)
    A_pad = _round_up(action_dim, 128)
    TK = _choose_tk(repr_dim)
    K_pad = _round_up(repr_dim, TK)

    def pad2(w, rows, cols):
        return jnp.pad(w.astype(jnp.bfloat16),
                       ((0, rows - w.shape[0]), (0, cols - w.shape[1])))

    w1 = pad2(p["w1"], K_pad, F_pad)
    w2 = pad2(p["w2"], F_pad, H_pad)
    w3 = pad2(p["w3"], H_pad, H_pad)
    w4 = pad2(p["w4"], H_pad, A_pad)

    Dmax = max(F_pad, H_pad, A_pad)

    def row(v):
        v = v.reshape(1, -1).astype(jnp.float32)
        return jnp.pad(v, ((0, 0), (0, Dmax - v.shape[1])))   # pad cols = 0

    vec = jnp.concatenate(
        [row(p["b1"]), row(p["ln_g"]), row(p["ln_b"]),
         row(p["b2"]), row(p["b3"]), row(p["b4"])], axis=0)

    return {"w1": w1, "w2": w2, "w3": w3, "w4": w4, "vec": vec}


def init_params(key, repr_dim, feature_dim, hidden_dim, action_dim):
    """Deterministic synthetic init. Weights in bf16, biases / LN in f32."""
    ks = jax.random.split(key, 4)

    def lin(k, fan_in, fan_out):
        scale = 1.0 / jnp.sqrt(fan_in)
        w = jax.random.uniform(k, (fan_in, fan_out), jnp.float32, -scale, scale)
        b = jnp.zeros((1, fan_out), jnp.float32)
        return w.astype(jnp.bfloat16), b

    w1, b1 = lin(ks[0], repr_dim, feature_dim)
    w2, b2 = lin(ks[1], feature_dim, hidden_dim)
    w3, b3 = lin(ks[2], hidden_dim, hidden_dim)
    w4, b4 = lin(ks[3], hidden_dim, action_dim)
    return {
        "w1": w1, "b1": b1,
        "ln_g": jnp.ones((1, feature_dim), jnp.float32),
        "ln_b": jnp.zeros((1, feature_dim), jnp.float32),
        "w2": w2, "b2": b2,
        "w3": w3, "b3": b3,
        "w4": w4, "b4": b4,
    }


if __name__ == "__main__":
    # Small shapes consistent with Actor(repr_dim, action_shape, feature_dim, hidden_dim)
    B = 8
    repr_dim = 64
    feature_dim = 32
    hidden_dim = 32
    action_dim = 4

    key = jax.random.PRNGKey(0)
    k_obs, k_par = jax.random.split(key)
    # obs produced in bf16 upstream (dominant HBM stream).
    obs = jax.random.normal(k_obs, (B, repr_dim), jnp.float32).astype(jnp.bfloat16)
    std = jnp.float32(0.2)

    raw = init_params(k_par, repr_dim, feature_dim, hidden_dim, action_dim)
    prep = prepare_actor_params(raw)

    mu, std_out = actor_forward(obs, std,
                                prep["w1"], prep["w2"], prep["w3"], prep["w4"],
                                prep["vec"],
                                feature_dim=feature_dim, action_dim=action_dim)
    jax.block_until_ready((mu, std_out))

    # Pure-JAX reference on the UNPADDED params, mirroring the kernel's
    # precision (bf16 MXU inputs, f32 accumulation / elementwise).
    def ref(obs, std, p):
        def mm(x, w):
            return jnp.dot(x.astype(jnp.bfloat16), w,
                           preferred_element_type=jnp.float32)
        h = mm(obs, p["w1"]) + p["b1"]
        m = h.mean(-1, keepdims=True)
        v = ((h - m) ** 2).mean(-1, keepdims=True)
        h = (h - m) / jnp.sqrt(v + 1e-5) * p["ln_g"] + p["ln_b"]
        h = jnp.tanh(h)
        h = jnp.maximum(mm(h, p["w2"]) + p["b2"], 0.0)
        h = jnp.maximum(mm(h, p["w3"]) + p["b3"], 0.0)
        mu = jnp.tanh(mm(h, p["w4"]) + p["b4"])
        return mu, jnp.full_like(mu, std)

    mu_ref, std_ref = ref(obs, std, raw)
    assert jnp.allclose(mu, mu_ref, atol=2e-3, rtol=2e-3), (
        jnp.max(jnp.abs(mu - mu_ref)))
    assert jnp.allclose(std_out, std_ref, atol=1e-6)
    print("KERNEL_OK")
</pallas_src>

<mosaic_0001>
module attributes {stable_mosaic.version = 11 : i64} {
  func.func @actor_kernel(%arg0: i32, %arg1: i32, %arg2: memref<16x128xbf16, #tpu.memory_space<vmem>>, %arg3: memref<128x128xbf16, #tpu.memory_space<vmem>>, %arg4: memref<128x128xbf16, #tpu.memory_space<vmem>>, %arg5: memref<128x128xbf16, #tpu.memory_space<vmem>>, %arg6: memref<128x128xbf16, #tpu.memory_space<vmem>>, %arg7: memref<6x128xf32, #tpu.memory_space<vmem>>, %arg8: memref<16x128xf32, #tpu.memory_space<vmem>>, %arg9: memref<16x128xf32, #tpu.memory_space<vmem>>) attributes {dimension_semantics = [#tpu.dimension_semantics<parallel>, #tpu.dimension_semantics<arbitrary>], iteration_bounds = array<i64: 1, 1>, scalar_prefetch = 0 : i64, scratch_operands = 1 : i64, tpu.core_type = #tpu.core_type<tc>, window_params = [{transform_indices = @transform_0, window_bounds = array<i64: 16, 128>}, {pipeline_mode = #tpu.pipeline_mode<synchronous>, transform_indices = @transform_1, window_bounds = array<i64: 128, 128>}, {pipeline_mode = #tpu.pipeline_mode<synchronous>, transform_indices = @transform_2, window_bounds = array<i64: 128, 128>}, {pipeline_mode = #tpu.pipeline_mode<synchronous>, transform_indices = @transform_3, window_bounds = array<i64: 128, 128>}, {pipeline_mode = #tpu.pipeline_mode<synchronous>, transform_indices = @transform_4, window_bounds = array<i64: 128, 128>}, {pipeline_mode = #tpu.pipeline_mode<synchronous>, transform_indices = @transform_5, window_bounds = array<i64: 6, 128>}, {transform_indices = @transform_6, window_bounds = array<i64: 16, 128>}]} {
    %c0_i32 = arith.constant 0 : i32
    %0 = arith.cmpi eq, %arg1, %c0_i32 : i32
    %1 = arith.extui %0 : i1 to i32
    %c0_i32_0 = arith.constant 0 : i32
    %2 = arith.cmpi ne, %1, %c0_i32_0 : i32
    scf.if %2 {
      %cst_9 = arith.constant 0.000000e+00 : f32
      %15 = vector.broadcast %cst_9 : f32 to vector<16x128xf32>
      %c0_10 = arith.constant 0 : index
      %c0_11 = arith.constant 0 : index
      %16 = vector.load %arg9[%c0_10, %c0_11] : memref<16x128xf32, #tpu.memory_space<vmem>>, vector<16x128xf32>
      tpu.vector_store %arg9[%c0_10, %c0_11], %15 {strides = array<i32>} : memref<16x128xf32, #tpu.memory_space<vmem>>, vector<16x128xf32>,
    } else {
    }
    %c128_i32 = arith.constant 128 : i32
    %3 = arith.muli %arg1, %c128_i32 : i32
    %4 = tpu.assume_multiple %3, 128 : i32
    %c0 = arith.constant 0 : index
    %c0_1 = arith.constant 0 : index
    %5 = vector.load %arg9[%c0, %c0_1] : memref<16x128xf32, #tpu.memory_space<vmem>>, vector<16x128xf32>
    %c0_2 = arith.constant 0 : index
    %c0_3 = arith.constant 0 : index
    %6 = vector.load %arg2[%c0_2, %c0_3] : memref<16x128xbf16, #tpu.memory_space<vmem>>, vector<16x128xbf16>
    %7 = arith.index_cast %4 : i32 to index
    %c0_4 = arith.constant 0 : index
    %8 = vector.load %arg3[%7, %c0_4] : memref<128x128xbf16, #tpu.memory_space<vmem>>, vector<128x128xbf16>
    %cst = arith.constant dense<0.000000e+00> : vector<16x128xf32>
    %9 = tpu.matmul %6, %8, %cst {dimension_numbers = #tpu.dot_dimension_numbers<[1], [0], [0], [1], [0, 0, 1, 1], [], []>} : vector<16x128xbf16>, vector<128x128xbf16>, vector<16x128xf32> -> vector<16x128xf32>
    %10 = arith.addf %5, %9 : vector<16x128xf32>
    %c0_5 = arith.constant 0 : index
    %c0_6 = arith.constant 0 : index
    %11 = vector.load %arg9[%c0_5, %c0_6] : memref<16x128xf32, #tpu.memory_space<vmem>>, vector<16x128xf32>
    tpu.vector_store %arg9[%c0_5, %c0_6], %10 {strides = array<i32>} : memref<16x128xf32, #tpu.memory_space<vmem>>, vector<16x128xf32>,
    %c0_i32_7 = arith.constant 0 : i32
    %12 = arith.cmpi eq, %arg1, %c0_i32_7 : i32
    %13 = arith.extui %12 : i1 to i32
    %c0_i32_8 = arith.constant 0 : i32
    %14 = arith.cmpi ne, %13, %c0_i32_8 : i32
    scf.if %14 {
      %c0_9 = arith.constant 0 : index
      %c0_10 = arith.constant 0 : index
      %15 = vector.load %arg7[%c0_9, %c0_10] : memref<6x128xf32, #tpu.memory_space<vmem>>, vector<6x128xf32>
      %16 = vector.extract_strided_slice %15 {offsets = [0, 0], sizes = [1, 128], strides = [1, 1]} : vector<6x128xf32> to vector<1x128xf32>
      %17 = vector.extract_strided_slice %15 {offsets = [1, 0], sizes = [1, 128], strides = [1, 1]} : vector<6x128xf32> to vector<1x128xf32>
      %18 = vector.extract_strided_slice %15 {offsets = [2, 0], sizes = [1, 128], strides = [1, 1]} : vector<6x128xf32> to vector<1x128xf32>
      %19 = vector.extract_strided_slice %15 {offsets = [3, 0], sizes = [1, 128], strides = [1, 1]} : vector<6x128xf32> to vector<1x128xf32>
      %20 = vector.extract_strided_slice %15 {offsets = [4, 0], sizes = [1, 128], strides = [1, 1]} : vector<6x128xf32> to vector<1x128xf32>
      %21 = vector.extract_strided_slice %15 {offsets = [5, 0], sizes = [1, 128], strides = [1, 1]} : vector<6x128xf32> to vector<1x128xf32>
      %c0_11 = arith.constant 0 : index
      %c0_12 = arith.constant 0 : index
      %22 = vector.load %arg9[%c0_11, %c0_12] : memref<16x128xf32, #tpu.memory_space<vmem>>, vector<16x128xf32>
      %23 = vector.broadcast %16 : vector<1x128xf32> to vector<16x128xf32>
      %24 = arith.addf %22, %23 : vector<16x128xf32>
      %cst_13 = arith.constant dense<0.000000e+00> : vector<16xf32>
      %25 = vector.multi_reduction <add>, %24, %cst_13 [1] : vector<16x128xf32> to vector<16xf32>
      %26 = vector.shape_cast %25 : vector<16xf32> to vector<16x1xf32>
      %cst_14 = arith.constant 3.125000e-02 : f32
      %27 = vector.broadcast %cst_14 : f32 to vector<16x1xf32>
      %28 = arith.mulf %26, %27 : vector<16x1xf32>
      %29 = arith.mulf %24, %24 : vector<16x128xf32>
      %cst_15 = arith.constant dense<0.000000e+00> : vector<16xf32>
      %30 = vector.multi_reduction <add>, %29, %cst_15 [1] : vector<16x128xf32> to vector<16xf32>
      %31 = vector.shape_cast %30 : vector<16xf32> to vector<16x1xf32>
      %cst_16 = arith.constant 3.125000e-02 : f32
      %32 = vector.broadcast %cst_16 : f32 to vector<16x1xf32>
      %33 = arith.mulf %31, %32 : vector<16x1xf32>
      %34 = arith.mulf %28, %28 : vector<16x1xf32>
      %35 = arith.subf %33, %34 : vector<16x1xf32>
      %cst_17 = arith.constant 0.000000e+00 : f32
      %36 = vector.broadcast %cst_17 : f32 to vector<16x1xf32>
      %37 = arith.maximumf %35, %36 : vector<16x1xf32>
      %38 = vector.broadcast %28 : vector<16x1xf32> to vector<16x128xf32>
      %39 = arith.subf %24, %38 : vector<16x128xf32>
      %cst_18 = arith.constant 9.99999974E-6 : f32
      %40 = vector.broadcast %cst_18 : f32 to vector<16x1xf32>
      %41 = arith.addf %37, %40 : vector<16x1xf32>
      %42 = math.rsqrt %41 : vector<16x1xf32>
      %43 = vector.broadcast %42 : vector<16x1xf32> to vector<16x128xf32>
      %44 = arith.mulf %39, %43 : vector<16x128xf32>
      %45 = vector.broadcast %17 : vector<1x128xf32> to vector<16x128xf32>
      %46 = arith.mulf %44, %45 : vector<16x128xf32>
      %47 = vector.broadcast %18 : vector<1x128xf32> to vector<16x128xf32>
      %48 = arith.addf %46, %47 : vector<16x128xf32>
      %49 = math.tanh %48 : vector<16x128xf32>
      %50 = arith.truncf %49 : vector<16x128xf32> to vector<16x128xbf16>
      %c0_19 = arith.constant 0 : index
      %c0_20 = arith.constant 0 : index
      %51 = vector.load %arg4[%c0_19, %c0_20] : memref<128x128xbf16, #tpu.memory_space<vmem>>, vector<128x128xbf16>
      %cst_21 = arith.constant dense<0.000000e+00> : vector<16x128xf32>
      %52 = tpu.matmul %50, %51, %cst_21 {dimension_numbers = #tpu.dot_dimension_numbers<[1], [0], [0], [1], [0, 0, 1, 1], [], []>} : vector<16x128xbf16>, vector<128x128xbf16>, vector<16x128xf32> -> vector<16x128xf32>
      %53 = vector.broadcast %19 : vector<1x128xf32> to vector<16x128xf32>
      %54 = arith.addf %52, %53 : vector<16x128xf32>
      %cst_22 = arith.constant 0.000000e+00 : f32
      %55 = vector.broadcast %cst_22 : f32 to vector<16x128xf32>
      %56 = arith.maximumf %54, %55 : vector<16x128xf32>
      %57 = arith.truncf %56 : vector<16x128xf32> to vector<16x128xbf16>
      %c0_23 = arith.constant 0 : index
      %c0_24 = arith.constant 0 : index
      %58 = vector.load %arg5[%c0_23, %c0_24] : memref<128x128xbf16, #tpu.memory_space<vmem>>, vector<128x128xbf16>
      %cst_25 = arith.constant dense<0.000000e+00> : vector<16x128xf32>
      %59 = tpu.matmul %57, %58, %cst_25 {dimension_numbers = #tpu.dot_dimension_numbers<[1], [0], [0], [1], [0, 0, 1, 1], [], []>} : vector<16x128xbf16>, vector<128x128xbf16>, vector<16x128xf32> -> vector<16x128xf32>
      %60 = vector.broadcast %20 : vector<1x128xf32> to vector<16x128xf32>
      %61 = arith.addf %59, %60 : vector<16x128xf32>
      %cst_26 = arith.constant 0.000000e+00 : f32
      %62 = vector.broadcast %cst_26 : f32 to vector<16x128xf32>
      %63 = arith.maximumf %61, %62 : vector<16x128xf32>
      %64 = arith.truncf %63 : vector<16x128xf32> to vector<16x128xbf16>
      %c0_27 = arith.constant 0 : index
      %c0_28 = arith.constant 0 : index
      %65 = vector.load %arg6[%c0_27, %c0_28] : memref<128x128xbf16, #tpu.memory_space<vmem>>, vector<128x128xbf16>
      %cst_29 = arith.constant dense<0.000000e+00> : vector<16x128xf32>
      %66 = tpu.matmul %64, %65, %cst_29 {dimension_numbers = #tpu.dot_dimension_numbers<[1], [0], [0], [1], [0, 0, 1, 1], [], []>} : vector<16x128xbf16>, vector<128x128xbf16>, vector<16x128xf32> -> vector<16x128xf32>
      %67 = vector.broadcast %21 : vector<1x128xf32> to vector<16x128xf32>
      %68 = arith.addf %66, %67 : vector<16x128xf32>
      %69 = math.tanh %68 : vector<16x128xf32>
      %c0_30 = arith.constant 0 : index
      %c0_31 = arith.constant 0 : index
      %70 = vector.load %arg8[%c0_30, %c0_31] : memref<16x128xf32, #tpu.memory_space<vmem>>, vector<16x128xf32>
      tpu.vector_store %arg8[%c0_30, %c0_31], %69 {strides = array<i32>} : memref<16x128xf32, #tpu.memory_space<vmem>>, vector<16x128xf32>,
    } else {
    }
    return
  }
  func.func @transform_0(%arg0: i32, %arg1: i32) -> (i32, i32) {
    %c0_i32 = arith.constant 0 : i32
    return %arg0, %arg1 : i32, i32
  }
  func.func @transform_1(%arg0: i32, %arg1: i32) -> (i32, i32) {
    %c0_i32 = arith.constant 0 : i32
    %c0_i32_0 = arith.constant 0 : i32
    %c0_i32_1 = arith.constant 0 : i32
    return %c0_i32, %c0_i32_0 : i32, i32
  }
  func.func @transform_2(%arg0: i32, %arg1: i32) -> (i32, i32) {
    %c0_i32 = arith.constant 0 : i32
    %c0_i32_0 = arith.constant 0 : i32
    %c0_i32_1 = arith.constant 0 : i32
    return %c0_i32, %c0_i32_0 : i32, i32
  }
  func.func @transform_3(%arg0: i32, %arg1: i32) -> (i32, i32) {
    %c0_i32 = arith.constant 0 : i32
    %c0_i32_0 = arith.constant 0 : i32
    %c0_i32_1 = arith.constant 0 : i32
    return %c0_i32, %c0_i32_0 : i32, i32
  }
  func.func @transform_4(%arg0: i32, %arg1: i32) -> (i32, i32) {
    %c0_i32 = arith.constant 0 : i32
    %c0_i32_0 = arith.constant 0 : i32
    %c0_i32_1 = arith.constant 0 : i32
    return %c0_i32, %c0_i32_0 : i32, i32
  }
  func.func @transform_5(%arg0: i32, %arg1: i32) -> (i32, i32) {
    %c0_i32 = arith.constant 0 : i32
    %c0_i32_0 = arith.constant 0 : i32
    %c0_i32_1 = arith.constant 0 : i32
    return %c0_i32, %c0_i32_0 : i32, i32
  }
  func.func @transform_6(%arg0: i32, %arg1: i32) -> (i32, i32) {
    %c0_i32 = arith.constant 0 : i32
    %c0_i32_0 = arith.constant 0 : i32
    return %arg0, %c0_i32 : i32, i32
  }
}

</mosaic_0001>

<bundles_post_ra>
// kernel: actor_forward.1
= control target key start
LH: loop header
LB: loop body
LE: loop exit
PB: predicated region body
PF: predicated region fallthrough
CT: control target
= control target key end

     0   :  { %11 = vsyncpa [#allocation4], 0  ;;  %s879_s0 = inlined_call_operand.vmem [shape: bf16[16,128], index: 0, kind: input, shape index: {}]   ;;  %s880_s1 = inlined_call_operand.hbm [shape: bf16[128,128], index: 1, kind: input, shape index: {}]   ;;  %s881_s2 = inlined_call_operand.hbm [shape: bf16[128,128], index: 2, kind: input, shape index: {}]   ;;  %s882_s3 = inlined_call_operand.hbm [shape: bf16[128,128], index: 3, kind: input, shape index: {}]   ;;  %s883_s4 = inlined_call_operand.hbm [shape: bf16[128,128], index: 4, kind: input, shape index: {}]   ;;  %s884_s5 = inlined_call_operand.vmem [shape: f32[6,128], index: 5, kind: input, shape index: {}]   ;;  %s885_s6 = inlined_call_operand.vmem [shape: f32[16,128], index: 6, kind: output, shape index: {}]  }
   0x1   :  { %12 = vsyncpa [#allocation6], 0 }
   0x2   :  { %13 = vsyncpa [#allocation9], 0  ;;  %s33_s23 = sshll.u32 %s881_s2, 4  ;;  %s794_s24 = smov [#allocation5]   ;;  %s34_s23 = int_to_ptr.hbm [resolvable:$true] %s33_s23 }
   0x3   :  { %s35_s25 = sshll.u32 %s794_s24, 4  ;;  %s20_s28 = sshll.u32 %s880_s1, 4  ;;  %s36_s25 = int_to_ptr.vmem [resolvable:$true] %s35_s25  ;;  %s21_s28 = int_to_ptr.hbm [resolvable:$true] %s20_s28 }
   0x4   :  { %s795_s29 = smov 64   ;;  %s796_s30 = smov 4  }
   0x5   :  { %41 = dma.hbm_to_vmem [thread:$0]  %s34_s23, 1024, %s36_s25, [#allocation6], %s795_s29, %s795_s29, %s796_s30  }
   0x6   :  { %s797_s7 = smov [#allocation3]   ;;  %s46_s11 = sshll.u32 %s882_s3, 4  ;;  %s47_s11 = int_to_ptr.hbm [resolvable:$true] %s46_s11 }
   0x7   :  { %s22_s8 = sshll.u32 %s797_s7, 4  ;;  %s59_s13 = sshll.u32 %s883_s4, 4  ;;  %s23_s8 = int_to_ptr.vmem [resolvable:$true] %s22_s8  ;;  %s60_s13 = int_to_ptr.hbm [resolvable:$true] %s59_s13 }
   0x8   :  { %28 = dma.hbm_to_vmem [thread:$0]  %s21_s28, 1024, %s23_s8, [#allocation4], %s795_s29, %s795_s29, %s796_s30  }
   0x9   :  { %s798_s14 = smov [#allocation7]   ;;  %s799_s1 = smov [#allocation8]  }
   0xa   :  { %s48_s15 = sshll.u32 %s798_s14, 4  ;;  %s61_s16 = sshll.u32 %s799_s1, 4  ;;  %s49_s15 = int_to_ptr.vmem [resolvable:$true] %s48_s15  ;;  %s62_s16 = int_to_ptr.vmem [resolvable:$true] %s61_s16 }
   0xb   :  { %54 = dma.hbm_to_vmem [thread:$0]  %s47_s11, 1024, %s49_s15, [#allocation6], %s795_s29, %s795_s29, %s796_s30  }
   0xc   :  { %67 = dma.hbm_to_vmem [thread:$0]  %s60_s13, 1024, %s62_s16, [#allocation9], %s795_s29, %s795_s29, %s796_s30  }
   0xd   :  { %788 = dma.done.wait [#allocation4], 1024  }
   0xe   :  { %789 = vsyncadd [#allocation4], 4294966272 }
   0xf   :  { %790 = dma.done.wait [#allocation6], 2048  }
  0x10   :  { %791 = vsyncadd [#allocation6], 4294965248 }
  0x11   :  { %792 = dma.done.wait [#allocation9], 1024  }
  0x12   :  { %793 = vsyncadd [#allocation9], 4294966272  ;;  %v649_v0 = vld [vmem:[#allocation3 + $0x38] sm:$0xff]  ;;  %v648_v1 = vld [vmem:[#allocation3 + $0x30] sm:$0xff] }
  0x13   :  { %171 = vmatpush.bf16.msra.mxu0 %v649_v0  ;;  %v647_v2 = vld [vmem:[#allocation3 + $0x28] sm:$0xff]  ;;  %v646_v3 = vld [vmem:[#allocation3 + $0x20] sm:$0xff]  ;;  %v645_v4 = vld [vmem:[#allocation3 + $0x18] sm:$0xff] }
  0x14   :  { %v644_v5 = vld [vmem:[#allocation3 + $0x10] sm:$0xff]  ;;  %v643_v6 = vld [vmem:[#allocation3 + $0x8] sm:$0xff]  ;;  %v642_v7 = vld [vmem:[#allocation3] sm:$0xff] }
  0x15   :  { %v641_v8 = vld [vmem:[%s879_s0] sm:$0xff]  ;;  %v657_v17 = vld [vmem:[#allocation5 + $0x38] sm:$0xff]  ;;  %v656_v18 = vld [vmem:[#allocation5 + $0x30] sm:$0xff] }
  0x16   :  { %v853_v9 = vld [vmem:[%s884_s5] sm:$0x3f]  ;;  %318 = vmatpush.bf16.msra.mxu1 %v657_v17  ;;  %v655_v19 = vld [vmem:[#allocation5 + $0x28] sm:$0xff]  ;;  %v653_v26 = vld [vmem:[#allocation5 + $0x18] sm:$0xff] }
  0x17   :  { %172 = vmatpush.bf16.msra.mxu0 %v648_v1  ;;  %v195_v10 = vperm.slane %v853_v9, 0  ;;  %v654_v21 = vld [vmem:[#allocation5 + $0x20] sm:$0xff]  ;;  %v652_v28 = vld [vmem:[#allocation5 + $0x10] sm:$0xff]  ;;  %v651_v34 = vld [vmem:[#allocation5 + $0x8] sm:$0xff]  ;;  %v244_v57 = vperm.slane %v853_v9, 1  ;;  %v247_v62 = vperm.slane %v853_v9, 2 }
  0x18   :  { %v650_v38 = vld [vmem:[#allocation5] sm:$0xff]  ;;  %v665_v44 = vld [vmem:[#allocation7 + $0x38] sm:$0xff]  ;;  %v664_v46 = vld [vmem:[#allocation7 + $0x30] sm:$0xff] }
  0x19   :  { %400 = vmatpush.bf16.msra.mxu2 %v665_v44  ;;  %v663_v51 = vld [vmem:[#allocation7 + $0x28] sm:$0xff]  ;;  %v662_v58 = vld [vmem:[#allocation7 + $0x20] sm:$0xff] }
  0x1a   :  { %319 = vmatpush.bf16.msra.mxu1 %v656_v18  ;;  %v269_v18 = vperm.slane %v853_v9, 3 }
  0x1b   :  { %173 = vmatpush.bf16.msra.mxu0 %v647_v2 }
  0x1d   :  { %401 = vmatpush.bf16.msra.mxu2 %v664_v46 }
  0x1e   :  { %320 = vmatpush.bf16.msra.mxu1 %v655_v19 }
  0x1f   :  { %174 = vmatpush.bf16.msra.mxu0 %v646_v3 }
  0x21   :  { %402 = vmatpush.bf16.msra.mxu2 %v663_v51 }
  0x22   :  { %321 = vmatpush.bf16.msra.mxu1 %v654_v21 }
  0x23   :  { %175 = vmatpush.bf16.msra.mxu0 %v645_v4 }
  0x25   :  { %403 = vmatpush.bf16.msra.mxu2 %v662_v58 }
  0x26   :  { %322 = vmatpush.bf16.msra.mxu1 %v653_v26  ;;  %v668_v26 = vld [vmem:[#allocation8 + $0x10] sm:$0xff] }
  0x27   :  { %176 = vmatpush.bf16.msra.mxu0 %v644_v5 }
  0x2a   :  { %323 = vmatpush.bf16.msra.mxu1 %v652_v28  ;;  %v666_v28 = vld [vmem:[#allocation8] sm:$0xff] }
  0x2b   :  { %177 = vmatpush.bf16.msra.mxu0 %v643_v6 }
  0x2e   :  { %324 = vmatpush.bf16.msra.mxu1 %v651_v34 }
  0x2f   :  { %178 = vmatpush.bf16.msra.mxu0 %v642_v7 }
  0x32   :  { %179 = vmatmul.bf16.vlgmr.msra.gmra.mxu0 %v641_v8  ;;  %325 = vmatpush.bf16.msra.mxu1 %v650_v38  ;;  %v661_v8 = vld [vmem:[#allocation7 + $0x18] sm:$0xff] }
  0x33   :  { %404 = vmatpush.bf16.msra.mxu2 %v661_v8 }
  0xaf   :  { %v180_v11 = vpop.f32.mrf.mxu0 }
  0xb0   :  { %v856_v12 = vadd.f32 %v195_v10, %v180_v11  ;;  %v659_v11 = vld [vmem:[#allocation7 + $0x8] sm:$0xff] }
  0xb2   :  { %198 = vadd.xlane.f32.xlu0 %v856_v12  ;;  %v204_v13 = vmul.f32 %v856_v12, %v856_v12 }
  0xb4   :  { %206 = vadd.xlane.f32.xlu1 %v204_v13  ;;  %v673_v13 = vld [vmem:[#allocation8 + $0x38] sm:$0xff] }
  0xb5   :  { %482 = vmatpush.bf16.msra.mxu3 %v673_v13 }
  0xb7   :  { %v182_v14 = vpop.f32.mrf.mxu0 }
  0xb8   :  { %v861_v15 = vadd.f32 %v195_v10, %v182_v14  ;;  %v660_v10 = vld [vmem:[#allocation7 + $0x10] sm:$0xff] }
  0xb9   :  { %405 = vmatpush.bf16.msra.mxu2 %v660_v10  ;;  %v672_v14 = vld [vmem:[#allocation8 + $0x30] sm:$0xff] }
  0xba   :  { %200 = vadd.xlane.f32.xlu0 %v861_v15  ;;  %v205_v16 = vmul.f32 %v861_v15, %v861_v15  ;;  %483 = vmatpush.bf16.msra.mxu3 %v672_v14 }
  0xbc   :  { %208 = vadd.xlane.f32.xlu1 %v205_v16  ;;  %v670_v16 = vld [vmem:[#allocation8 + $0x20] sm:$0xff] }
  0xbd   :  { %406 = vmatpush.bf16.msra.mxu2 %v659_v11 }
 0x125   :  { %v199_v20 = vpop.xlane.xlu0 %198 }
 0x126   :  { %v202_v22 = vmul.f32 0.03125, %v199_v20 }
 0x127   :  { %v207_v23 = vpop.xlane.xlu1 %206 }
 0x128   :  { %v212_v24 = vmul.f32 %v202_v22, %v202_v22  ;;  %v210_v25 = vmul.f32 0.03125, %v207_v23  ;;  %v218_v53 = vsub.f32 %v856_v12, %v202_v22  ;;  %v658_v12 = vld [vmem:[#allocation7] sm:$0xff] }
 0x129   :  { %407 = vmatpush.bf16.msra.mxu2 %v658_v12 }
 0x12a   :  { %v214_v27 = vsub.f32 %v210_v25, %v212_v24  ;;  %v669_v25 = vld [vmem:[#allocation8 + $0x18] sm:$0xff] }
 0x12c   :  { %v216_v29 = vmax.f32 %v214_v27, 0.0  ;;  %v667_v27 = vld [vmem:[#allocation8 + $0x8] sm:$0xff] }
 0x12d   :  { %v201_v30 = vpop.xlane.xlu0 %200 }
 0x12e   :  { %v220_v31 = vadd.f32 1e-05, %v216_v29  ;;  %v203_v32 = vmul.f32 0.03125, %v201_v30  ;;  %v351_v30 = vperm.slane %v853_v9, 4 }
 0x12f   :  { %v209_v33 = vpop.xlane.xlu1 %208 }
 0x130   :  { %680 = vrsqrt.f32 %v220_v31  ;;  %v213_v35 = vmul.f32 %v203_v32, %v203_v32  ;;  %v211_v36 = vmul.f32 0.03125, %v209_v33  ;;  %vm228_vm1 = vweird.f32 %v220_v31 }
 0x131   :  { %v219_v63 = vsub.f32 %v861_v15, %v203_v32  ;;  %v671_v15 = vld [vmem:[#allocation8 + $0x28] sm:$0xff] }
 0x132   :  { %v215_v37 = vsub.f32 %v211_v36, %v213_v35  ;;  %484 = vmatpush.bf16.msra.mxu3 %v671_v15 }
 0x134   :  { %v217_v39 = vmax.f32 %v215_v37, 0.0  ;;  %v433_v37 = vperm.slane %v853_v9, 5 }
 0x136   :  { %v681_v40 = vpop.eup %680  ;;  %v221_v42 = vadd.f32 1e-05, %v217_v39  ;;  %485 = vmatpush.bf16.msra.mxu3 %v670_v16 }
 0x137   :  { %v223_v41 = vmul.f32 %v681_v40, %v220_v31  ;;  %vm229_vm0 = vweird.f32 %v681_v40 }
 0x138   :  { %682 = vrsqrt.f32 %v221_v42  ;;  %vm230_vm2 = vmor %vm228_vm1, %vm229_vm0  ;;  %vm238_vm4 = vweird.f32 %v221_v42 }
 0x139   :  { %v224_v43 = vmul.f32 %v681_v40, %v223_v41 }
 0x13a   :  { %486 = vmatpush.bf16.msra.mxu3 %v669_v25 }
 0x13b   :  { %v225_v45 = vmul.f32 0.5, %v224_v43 }
 0x13d   :  { %v226_v47 = vsub.f32 1.5, %v225_v45 }
 0x13e   :  { %v683_v48 = vpop.eup %682  ;;  %487 = vmatpush.bf16.msra.mxu3 %v668_v26 }
 0x13f   :  { %v227_v49 = vmul.f32 %v681_v40, %v226_v47  ;;  %v233_v50 = vmul.f32 %v683_v48, %v221_v42  ;;  %vm239_vm3 = vweird.f32 %v683_v48 }
 0x140   :  { %vm240_vm5 = vmor %vm238_vm4, %vm239_vm3 }
 0x141   :  { %v231_v52 = vsel %vm230_vm2, %v681_v40, %v227_v49  ;;  %v234_v54 = vmul.f32 %v683_v48, %v233_v50 }
 0x142   :  { %v242_v55 = vmul.f32 %v231_v52, %v218_v53  ;;  %488 = vmatpush.bf16.msra.mxu3 %v667_v27 }
 0x143   :  { %v235_v56 = vmul.f32 0.5, %v234_v54 }
 0x144   :  { %v245_v61 = vmul.f32 %v244_v57, %v242_v55 }
 0x145   :  { %v236_v59 = vsub.f32 1.5, %v235_v56 }
 0x146   :  { %v248_v2 = vadd.f32 %v247_v62, %v245_v61  ;;  %489 = vmatpush.bf16.msra.mxu3 %v666_v28 }
 0x147   :  { %v237_v60 = vmul.f32 %v683_v48, %v236_v59 }
 0x148   :  { %684 = vtanh.f32 %v248_v2 }
 0x149   :  { %v241_v0 = vsel %vm240_vm5, %v683_v48, %v237_v60 }
 0x14a   :  { %v243_v1 = vmul.f32 %v241_v0, %v219_v63 }
 0x14c   :  { %v246_v3 = vmul.f32 %v244_v57, %v243_v1 }
 0x14e   :  { %v249_v4 = vadd.f32 %v247_v62, %v246_v3  ;;  %v685_v5 = vpop.eup %684 }
 0x150   :  { %686 = vtanh.f32 %v249_v4 }
 0x156   :  { %v687_v6 = vpop.eup %686 }
 0x157   :  { %v252_v7 = vpack.c.bf16 %v687_v6, %v685_v5 }
 0x159   :  { %326 = vmatmul.bf16.vlgmr.msra.gmra.mxu1 %v252_v7 }
 0x1d6   :  { %v327_v17 = vpop.f32.mrf.mxu1 }
 0x1d7   :  { %v328_v19 = vadd.f32 %v327_v17, %v269_v18 }
 0x1d9   :  { %v332_v22 = vmax.f32 %v328_v19, 0.0 }
 0x1de   :  { %v329_v20 = vpop.f32.mrf.mxu1 }
 0x1df   :  { %v330_v21 = vadd.f32 %v329_v20, %v269_v18 }
 0x1e1   :  { %v333_v23 = vmax.f32 %v330_v21, 0.0 }
 0x1e3   :  { %v334_v24 = vpack.c.bf16 %v333_v23, %v332_v22 }
 0x1e5   :  { %408 = vmatmul.bf16.vlgmr.msra.gmra.mxu2 %v334_v24 }
 0x268   :  { %v409_v29 = vpop.f32.mrf.mxu2 }
 0x269   :  { %v410_v31 = vadd.f32 %v409_v29, %v351_v30 }
 0x26b   :  { %v414_v34 = vmax.f32 %v410_v31, 0.0 }
 0x270   :  { %v411_v32 = vpop.f32.mrf.mxu2 }
 0x271   :  { %v412_v33 = vadd.f32 %v411_v32, %v351_v30 }
 0x273   :  { %v415_v35 = vmax.f32 %v412_v33, 0.0 }
 0x275   :  { %v416_v36 = vpack.c.bf16 %v415_v35, %v414_v34 }
 0x277   :  { %490 = vmatmul.bf16.vlgmr.msra.gmra.mxu3 %v416_v36 }
 0x2fa   :  { %v491_v38 = vpop.f32.mrf.mxu3 }
 0x2fb   :  { %v492_v39 = vadd.f32 %v491_v38, %v433_v37 }
 0x2fd   :  { %688 = vtanh.f32 %v492_v39 }
 0x302   :  { %v493_v40 = vpop.f32.mrf.mxu3 }
 0x303   :  { %v689_v41 = vpop.eup %688  ;;  %v494_v42 = vadd.f32 %v493_v40, %v433_v37 }
 0x304   :  { %498 = vst [vmem:[%s885_s6] sm:$0xff] %v689_v41 }
 0x305   :  { %690 = vtanh.f32 %v494_v42 }
 0x30b   :  { %v691_v43 = vpop.eup %690 }
 0x30c   :  { %499 = vst [vmem:[%s885_s6 + $0x8] sm:$0xff] %v691_v43 }
 0x30d   :  { %504 = vsyncpa [#allocation4], 1 }
 0x30e   :  { %505 = vsyncpa [#allocation6], 1 }
 0x30f   :  { %506 = vsyncpa [#allocation9], 1 }

</bundles_post_ra>
